<compile_context>
chip_gen: v7x
topology: tpu7x:2x2x1
jax: 0.10.0
libtpu: 0.0.40
codegen_flags: <defaults>
</compile_context>

<pallas_src>
import functools

import jax
import jax.numpy as jnp
from jax.experimental import pallas as pl
from jax.experimental.pallas import tpu as pltpu


def _triplet_loss_kernel(x_ref, y_ref, y_norm_ref, neg_idx_ref, neg_ynorm_ref,
                         out_ref, acc_ref, *, alpha, hardest):
    i = pl.program_id(0)
    nb = pl.num_programs(0)
    tb = x_ref.shape[0]            # rows in this batch strip
    b_total = y_ref.shape[0]       # full batch size

    @pl.when(i == 0)
    def _init():
        acc_ref[...] = jnp.zeros_like(acc_ref)

    # MXU operands stay in the input dtype (bf16 runs at full MXU rate);
    # element-wise math is done in f32 (v5e's VPU has no bf16).
    x = x_ref[...]                                        # (tb, D)
    xs = x.astype(jnp.float32)
    # Matching positive rows, sliced from the resident y block (no second
    # HBM read / strip buffer for point_pos).
    row0 = pl.multiple_of(i * tb, tb)
    ys = y_ref[pl.ds(row0, tb), :].astype(jnp.float32)    # (tb, D)

    # d = d_pos - d_neg: the ||x_i||^2 term cancels exactly, never computed.
    # pos_part[i] = ||y_i||^2 - 2<x_i, y_i>   (row-wise VPU reduce over D)
    pos_part = jnp.sum(ys * (ys - 2.0 * xs), axis=1, keepdims=True)    # (tb,1)

    # xy[i, j] = <x_i, y_j> on the MXU; contracting dim 1 of both operands is
    # the standard q@k^T form -> no explicit y^T is materialized.
    xy = jax.lax.dot_general(x, y_ref[...], (((1,), (1,)), ((), ())),
                             preferred_element_type=jnp.float32)       # (tb,B)

    col = jax.lax.broadcasted_iota(jnp.int32, (tb, b_total), 1)
    if hardest:
        # m[i, j] = ||y_j||^2 - 2<x_i, y_j> = dist[i, j] - ||x_i||^2; exclude
        # the diagonal (global row index == column) and min-reduce over j.
        m = y_norm_ref[...] - 2.0 * xy                                 # (tb,B)
        row = jax.lax.broadcasted_iota(jnp.int32, (tb, b_total), 0) + i * tb
        neg_part = jnp.min(jnp.where(row == col, jnp.inf, m),
                           axis=1, keepdims=True)                      # (tb,1)
    else:
        # Gather <x_i, y_neg(i)> straight from xy with a one-hot mask; the
        # matching ||y_neg(i)||^2 was gathered once in the wrapper.  (If the
        # random neg_idx[i] == i the "negative" is the anchor's own positive,
        # exactly like torch.randint in the original module.)
        neg_idx = neg_idx_ref[...]                                     # (tb,1)
        xy_neg = jnp.sum(jnp.where(col == neg_idx, xy, 0.0),
                         axis=1, keepdims=True)                        # (tb,1)
        neg_part = neg_ynorm_ref[...] - 2.0 * xy_neg                   # (tb,1)

    z = alpha * (pos_part - neg_part)                                  # (tb,1)
    # Numerically stable softplus == log(1 + exp(z)); no f32 overflow.
    loss = jnp.maximum(z, 0.0) + jnp.log(1.0 + jnp.exp(-jnp.abs(z)))   # (tb,1)

    acc_ref[...] += jnp.sum(loss, axis=0, keepdims=True)               # (1,1)

    @pl.when(i == nb - 1)
    def _finalize():
        out_ref[...] = acc_ref[...] * (1.0 / b_total)


def _vmem_limit_bytes():
    """~78% of physical VMEM: ~50 MiB on v7x, ~100 MiB on v5e/v6e."""
    try:
        cap = getattr(pltpu.get_tpu_info(), "vmem_capacity_bytes", None)
        if cap:
            return int(cap * 0.78)
    except Exception:
        pass
    return 64 * 1024 * 1024


def _pick_row_strip(b, d, itemsize, hardest, budget):
    """Largest row strip (256-multiples first, for the v6e/v7x MXU) dividing b
    whose working set fits the VMEM budget.  Counts the resident y / (1,B)
    norm blocks, double-buffered strip inputs, the f32 casts and the (tb, B)
    f32 temporaries."""
    resident = 2 * (b * d * itemsize + b * 4)            # y block + y_norm

    def fits(tb):
        strips = 2 * (tb * d * itemsize + 2 * tb * 4)    # x strip + neg idx/norm
        casts = 2 * tb * d * 4                           # xs, ys in f32
        wide = (2 if hardest else 1) * tb * b * 4        # xy (+ masked m)
        return resident + strips + casts + wide <= budget

    for cand in (512, 256, 128, 64, 32, 16, 8):
        if b % cand == 0 and fits(cand):
            return cand
    return b  # small / irregular batch: single strip (block == full dims)


def weighted_soft_margin_triplet_loss(img, point_pos, neg_idx=None,
                                      alpha=5.0, hardest=False):
    """img, point_pos: (B, D) float32/bfloat16; neg_idx: (B, 1) int. Scalar loss."""
    b, d = img.shape
    if neg_idx is None:
        neg_idx = jnp.zeros((b, 1), jnp.int32)
    neg_idx = neg_idx.astype(jnp.int32).reshape(b, 1)

    # Hoisted out of the grid loop: lane-dense ||y_j||^2 and its gather at the
    # sampled negatives (tiny (B,) gather, done once by XLA in the wrapper).
    y32 = point_pos.astype(jnp.float32)
    y_norm = jnp.sum(y32 * y32, axis=1).reshape(1, b)            # (1, B)
    neg_ynorm = y_norm[0, neg_idx[:, 0]].reshape(b, 1)           # (B, 1)

    vmem_limit = _vmem_limit_bytes()
    tb = _pick_row_strip(b, d, img.dtype.itemsize, hardest,
                         budget=int(vmem_limit * 0.75))
    nb = b // tb

    kernel = functools.partial(_triplet_loss_kernel,
                               alpha=float(alpha), hardest=bool(hardest))
    out = pl.pallas_call(
        kernel,
        out_shape=jax.ShapeDtypeStruct((1, 1), jnp.float32),
        grid=(nb,),
        in_specs=[
            pl.BlockSpec((tb, d), lambda i: (i, 0)),   # img row strip
            pl.BlockSpec((b, d), lambda i: (0, 0)),    # point_pos, resident
            pl.BlockSpec((1, b), lambda i: (0, 0)),    # ||y_j||^2, resident
            pl.BlockSpec((tb, 1), lambda i: (i, 0)),   # negative indices strip
            pl.BlockSpec((tb, 1), lambda i: (i, 0)),   # ||y_neg||^2 strip
        ],
        out_specs=pl.BlockSpec((1, 1), lambda i: (0, 0)),
        scratch_shapes=[pltpu.VMEM((1, 1), jnp.float32)],
        compiler_params=pltpu.CompilerParams(
            # The strip axis carries the running-sum accumulator -> arbitrary.
            dimension_semantics=("arbitrary",),
            vmem_limit_bytes=vmem_limit,
        ),
    )(img, point_pos, y_norm, neg_idx, neg_ynorm)
    return out[0, 0]


def _reference(img, point_pos, neg_idx, alpha=5.0, hardest=False):
    x = img.astype(jnp.float32)
    y = point_pos.astype(jnp.float32)
    b = x.shape[0]
    dist = (jnp.sum(x * x, 1)[:, None] + jnp.sum(y * y, 1)[None, :]
            - 2.0 * jnp.dot(x, y.T, precision=jax.lax.Precision.HIGHEST))
    d_pos = jnp.diag(dist)
    if hardest:
        d_neg = jnp.min(dist.at[jnp.arange(b), jnp.arange(b)].set(jnp.inf), axis=1)
    else:
        d_neg = dist[jnp.arange(b), neg_idx[:, 0]]
    z = alpha * (d_pos - d_neg)
    # log(1 + exp(z)) == softplus(z), evaluated stably (same function as the
    # torch module's torch.log(1 + torch.exp(alpha * d))).
    return jnp.mean(jnp.maximum(z, 0.0) + jnp.log1p(jnp.exp(-jnp.abs(z))))


if __name__ == "__main__":
    key = jax.random.PRNGKey(0)
    k1, k2, k3 = jax.random.split(key, 3)

    B, D = 8, 32
    img = jax.random.normal(k1, (B, D), dtype=jnp.float32)
    point_pos = jax.random.normal(k2, (B, D), dtype=jnp.float32)
    # Deterministic stand-in for torch.randint negatives.
    neg_idx = jax.random.randint(k3, (B, 1), 0, B, dtype=jnp.int32)

    loss = jax.block_until_ready(
        weighted_soft_margin_triplet_loss(img, point_pos, neg_idx,
                                          alpha=5.0, hardest=False))
    ref = _reference(img, point_pos, neg_idx, alpha=5.0, hardest=False)
    assert jnp.allclose(loss, ref, rtol=1e-3, atol=1e-3), (loss, ref)

    # hardest=True branch.
    loss_h = jax.block_until_ready(
        weighted_soft_margin_triplet_loss(img, point_pos, neg_idx,
                                          alpha=5.0, hardest=True))
    ref_h = _reference(img, point_pos, neg_idx, alpha=5.0, hardest=True)
    assert jnp.allclose(loss_h, ref_h, rtol=1e-3, atol=1e-3), (loss_h, ref_h)

    # bf16 inputs go straight to the MXU (f32 accumulation / elementwise math).
    loss_bf16 = jax.block_until_ready(
        weighted_soft_margin_triplet_loss(img.astype(jnp.bfloat16),
                                          point_pos.astype(jnp.bfloat16),
                                          neg_idx, alpha=5.0, hardest=False))
    assert jnp.isfinite(loss_bf16), loss_bf16

    print("KERNEL_OK")
</pallas_src>

<mosaic_0001>
module attributes {stable_mosaic.version = 11 : i64} {
  func.func @_triplet_loss_kernel(%arg0: i32, %arg1: memref<8x32xf32, #tpu.memory_space<vmem>>, %arg2: memref<8x32xf32, #tpu.memory_space<vmem>>, %arg3: memref<1x8xf32, #tpu.memory_space<vmem>>, %arg4: memref<8x1xi32, #tpu.memory_space<vmem>>, %arg5: memref<8x1xf32, #tpu.memory_space<vmem>>, %arg6: memref<1x1xf32, #tpu.memory_space<vmem>>, %arg7: memref<1x1xf32, #tpu.memory_space<vmem>>) attributes {dimension_semantics = [#tpu.dimension_semantics<arbitrary>], iteration_bounds = array<i64: 1>, scalar_prefetch = 0 : i64, scratch_operands = 1 : i64, tpu.core_type = #tpu.core_type<tc>, window_params = [{transform_indices = @transform_0, window_bounds = array<i64: 8, 32>}, {pipeline_mode = #tpu.pipeline_mode<synchronous>, transform_indices = @transform_1, window_bounds = array<i64: 8, 32>}, {pipeline_mode = #tpu.pipeline_mode<synchronous>, transform_indices = @transform_2, window_bounds = array<i64: 1, 8>}, {transform_indices = @transform_3, window_bounds = array<i64: 8, 1>}, {transform_indices = @transform_4, window_bounds = array<i64: 8, 1>}, {pipeline_mode = #tpu.pipeline_mode<synchronous>, transform_indices = @transform_5, window_bounds = array<i64: 1, 1>}]} {
    %c0_i32 = arith.constant 0 : i32
    %0 = arith.cmpi eq, %arg0, %c0_i32 : i32
    %1 = arith.extui %0 : i1 to i32
    %c0_i32_0 = arith.constant 0 : i32
    %2 = arith.cmpi ne, %1, %c0_i32_0 : i32
    scf.if %2 {
      %cst_25 = arith.constant 0.000000e+00 : f32
      %49 = vector.broadcast %cst_25 : f32 to vector<1x1xf32>
      %c0_26 = arith.constant 0 : index
      %c0_27 = arith.constant 0 : index
      %50 = vector.load %arg7[%c0_26, %c0_27] : memref<1x1xf32, #tpu.memory_space<vmem>>, vector<1x1xf32>
      tpu.vector_store %arg7[%c0_26, %c0_27], %49 {strides = array<i32>} : memref<1x1xf32, #tpu.memory_space<vmem>>, vector<1x1xf32>,
    } else {
    }
    %c0 = arith.constant 0 : index
    %c0_1 = arith.constant 0 : index
    %3 = vector.load %arg1[%c0, %c0_1] : memref<8x32xf32, #tpu.memory_space<vmem>>, vector<8x32xf32>
    %c8_i32 = arith.constant 8 : i32
    %4 = arith.muli %arg0, %c8_i32 : i32
    %5 = tpu.assume_multiple %4, 8 : i32
    %6 = arith.index_cast %5 : i32 to index
    %c0_2 = arith.constant 0 : index
    %7 = vector.load %arg2[%6, %c0_2] : memref<8x32xf32, #tpu.memory_space<vmem>>, vector<8x32xf32>
    %cst = arith.constant 2.000000e+00 : f32
    %8 = vector.broadcast %cst : f32 to vector<8x32xf32>
    %9 = arith.mulf %8, %3 : vector<8x32xf32>
    %10 = arith.subf %7, %9 : vector<8x32xf32>
    %11 = arith.mulf %7, %10 : vector<8x32xf32>
    %cst_3 = arith.constant dense<0.000000e+00> : vector<8xf32>
    %12 = vector.multi_reduction <add>, %11, %cst_3 [1] : vector<8x32xf32> to vector<8xf32>
    %13 = vector.shape_cast %12 : vector<8xf32> to vector<8x1xf32>
    %c0_4 = arith.constant 0 : index
    %c0_5 = arith.constant 0 : index
    %14 = vector.load %arg2[%c0_4, %c0_5] : memref<8x32xf32, #tpu.memory_space<vmem>>, vector<8x32xf32>
    %cst_6 = arith.constant dense<0.000000e+00> : vector<8x8xf32>
    %15 = tpu.matmul %3, %14, %cst_6 {dimension_numbers = #tpu.dot_dimension_numbers<[1], [1], [0], [0], [0, 0, 1, 0], [], []>} : vector<8x32xf32>, vector<8x32xf32>, vector<8x8xf32> -> vector<8x8xf32>
    %16 = tpu.iota {dimensions = array<i32: 1>} : vector<8x8xi32>
    %c0_7 = arith.constant 0 : index
    %c0_8 = arith.constant 0 : index
    %17 = vector.load %arg4[%c0_7, %c0_8] : memref<8x1xi32, #tpu.memory_space<vmem>>, vector<8x1xi32>
    %18 = vector.broadcast %17 : vector<8x1xi32> to vector<8x8xi32>
    %19 = arith.cmpi eq, %16, %18 : vector<8x8xi32>
    %cst_9 = arith.constant 0.000000e+00 : f32
    %20 = vector.broadcast %cst_9 : f32 to vector<8x8xf32>
    %21 = arith.select %19, %15, %20 : vector<8x8xi1>, vector<8x8xf32>
    %cst_10 = arith.constant dense<0.000000e+00> : vector<8xf32>
    %22 = vector.multi_reduction <add>, %21, %cst_10 [1] : vector<8x8xf32> to vector<8xf32>
    %23 = vector.shape_cast %22 : vector<8xf32> to vector<8x1xf32>
    %c0_11 = arith.constant 0 : index
    %c0_12 = arith.constant 0 : index
    %24 = vector.load %arg5[%c0_11, %c0_12] : memref<8x1xf32, #tpu.memory_space<vmem>>, vector<8x1xf32>
    %cst_13 = arith.constant 2.000000e+00 : f32
    %25 = vector.broadcast %cst_13 : f32 to vector<8x1xf32>
    %26 = arith.mulf %25, %23 : vector<8x1xf32>
    %27 = arith.subf %24, %26 : vector<8x1xf32>
    %28 = arith.subf %13, %27 : vector<8x1xf32>
    %cst_14 = arith.constant 5.000000e+00 : f32
    %29 = vector.broadcast %cst_14 : f32 to vector<8x1xf32>
    %30 = arith.mulf %29, %28 : vector<8x1xf32>
    %cst_15 = arith.constant 0.000000e+00 : f32
    %31 = vector.broadcast %cst_15 : f32 to vector<8x1xf32>
    %32 = arith.maximumf %30, %31 : vector<8x1xf32>
    %33 = math.absf %30 : vector<8x1xf32>
    %cst_16 = arith.constant 0.000000e+00 : f32
    %34 = vector.broadcast %cst_16 : f32 to vector<8x1xf32>
    %35 = arith.subf %34, %33 : vector<8x1xf32>
    %36 = math.exp %35 : vector<8x1xf32>
    %cst_17 = arith.constant 1.000000e+00 : f32
    %37 = vector.broadcast %cst_17 : f32 to vector<8x1xf32>
    %38 = arith.addf %37, %36 : vector<8x1xf32>
    %39 = math.log %38 : vector<8x1xf32>
    %40 = arith.addf %32, %39 : vector<8x1xf32>
    %c0_18 = arith.constant 0 : index
    %c0_19 = arith.constant 0 : index
    %41 = vector.load %arg7[%c0_18, %c0_19] : memref<1x1xf32, #tpu.memory_space<vmem>>, vector<1x1xf32>
    %cst_20 = arith.constant dense<0.000000e+00> : vector<1xf32>
    %42 = vector.multi_reduction <add>, %40, %cst_20 [0] : vector<8x1xf32> to vector<1xf32>
    %43 = vector.shape_cast %42 : vector<1xf32> to vector<1x1xf32>
    %44 = arith.addf %41, %43 : vector<1x1xf32>
    %c0_21 = arith.constant 0 : index
    %c0_22 = arith.constant 0 : index
    %45 = vector.load %arg7[%c0_21, %c0_22] : memref<1x1xf32, #tpu.memory_space<vmem>>, vector<1x1xf32>
    tpu.vector_store %arg7[%c0_21, %c0_22], %44 {strides = array<i32>} : memref<1x1xf32, #tpu.memory_space<vmem>>, vector<1x1xf32>,
    %c0_i32_23 = arith.constant 0 : i32
    %46 = arith.cmpi eq, %arg0, %c0_i32_23 : i32
    %47 = arith.extui %46 : i1 to i32
    %c0_i32_24 = arith.constant 0 : i32
    %48 = arith.cmpi ne, %47, %c0_i32_24 : i32
    scf.if %48 {
      %c0_25 = arith.constant 0 : index
      %c0_26 = arith.constant 0 : index
      %49 = vector.load %arg7[%c0_25, %c0_26] : memref<1x1xf32, #tpu.memory_space<vmem>>, vector<1x1xf32>
      %cst_27 = arith.constant 1.250000e-01 : f32
      %50 = vector.broadcast %cst_27 : f32 to vector<1x1xf32>
      %51 = arith.mulf %49, %50 : vector<1x1xf32>
      %c0_28 = arith.constant 0 : index
      %c0_29 = arith.constant 0 : index
      %52 = vector.load %arg6[%c0_28, %c0_29] : memref<1x1xf32, #tpu.memory_space<vmem>>, vector<1x1xf32>
      tpu.vector_store %arg6[%c0_28, %c0_29], %51 {strides = array<i32>} : memref<1x1xf32, #tpu.memory_space<vmem>>, vector<1x1xf32>,
    } else {
    }
    return
  }
  func.func @transform_0(%arg0: i32) -> (i32, i32) {
    %c0_i32 = arith.constant 0 : i32
    %c0_i32_0 = arith.constant 0 : i32
    return %arg0, %c0_i32 : i32, i32
  }
  func.func @transform_1(%arg0: i32) -> (i32, i32) {
    %c0_i32 = arith.constant 0 : i32
    %c0_i32_0 = arith.constant 0 : i32
    %c0_i32_1 = arith.constant 0 : i32
    return %c0_i32, %c0_i32_0 : i32, i32
  }
  func.func @transform_2(%arg0: i32) -> (i32, i32) {
    %c0_i32 = arith.constant 0 : i32
    %c0_i32_0 = arith.constant 0 : i32
    %c0_i32_1 = arith.constant 0 : i32
    return %c0_i32, %c0_i32_0 : i32, i32
  }
  func.func @transform_3(%arg0: i32) -> (i32, i32) {
    %c0_i32 = arith.constant 0 : i32
    %c0_i32_0 = arith.constant 0 : i32
    return %arg0, %c0_i32 : i32, i32
  }
  func.func @transform_4(%arg0: i32) -> (i32, i32) {
    %c0_i32 = arith.constant 0 : i32
    %c0_i32_0 = arith.constant 0 : i32
    return %arg0, %c0_i32 : i32, i32
  }
  func.func @transform_5(%arg0: i32) -> (i32, i32) {
    %c0_i32 = arith.constant 0 : i32
    %c0_i32_0 = arith.constant 0 : i32
    %c0_i32_1 = arith.constant 0 : i32
    return %c0_i32, %c0_i32_0 : i32, i32
  }
}

</mosaic_0001>

<bundles_post_ra>
// kernel: tpu_custom_call.1
= control target key start
LH: loop header
LB: loop body
LE: loop exit
PB: predicated region body
PF: predicated region fallthrough
CT: control target
= control target key end

     0   :  { %10 = vsyncpa [#allocation4], 0  ;;  %s511_s0 = inlined_call_operand.hbm [shape: f32[8,32], index: 0, kind: input, shape index: {}]   ;;  %s512_s1 = inlined_call_operand.hbm [shape: f32[8,32], index: 1, kind: input, shape index: {}]   ;;  %s513_s2 = inlined_call_operand.hbm [shape: f32[1,8], index: 2, kind: input, shape index: {}]   ;;  %s514_s3 = inlined_call_operand.hbm [shape: s32[8,1], index: 3, kind: input, shape index: {}]   ;;  %s515_s4 = inlined_call_operand.hbm [shape: f32[8,1], index: 4, kind: input, shape index: {}]   ;;  %s516_s5 = inlined_call_operand.hbm [shape: f32[1,1], index: 5, kind: output, shape index: {}]  }
   0x1   :  { %11 = vsyncpa [#allocation7], 0 }
   0x2   :  { %12 = vsyncpa [#allocation10], 0 }
   0x3   :  { %13 = vsyncpa [#allocation5], 0  ;;  %s397_s18 = smov [#allocation6]   ;;  %s398_s20 = smov [#allocation9]  }
   0x4   :  { %s30_s19 = sshll.u32 %s397_s18, 4  ;;  %s50_s21 = sshll.u32 %s398_s20, 4  ;;  %s31_s19 = int_to_ptr.vmem [resolvable:$true] %s30_s19  ;;  %s51_s21 = int_to_ptr.vmem [resolvable:$true] %s50_s21 }
   0x5   :  { %s257_s24 = scalar_lea.hbm %s512_s1, 128 }
   0x6   :  { %p258_p0 = scmp.ne.s32.totalorder %s512_s1, %s257_s24  ;;  %p261_p1 = scmp.lt.u32.totalorder %s257_s24, %s512_s1 }
   0x8   :  { %p263_p2 = pnand %p261_p1, %p258_p0 }
   0xa   :  { %266 = shalt.err (!%p263_p2)
}
   0xb   :  { %s267_s29 = scalar_lea.vmem %s31_s19, 128  ;;  %p272_p4 = scmp.lt.s32.totalorder %s31_s19, %s31_s19 }
   0xc   :  { %p268_p3 = scmp.ne.s32.totalorder %s31_s19, %s267_s29  ;;  %p273_p5 = scmp.lt.s32.totalorder %s267_s29, %s267_s29 }
   0xe   :  { %p274_p6 = por %p273_p5, %p272_p4 }
  0x10   :  { %p275_p7 = pnand %p274_p6, %p268_p3 }
  0x12   :  { %278 = shalt.err (!%p275_p7)
}
  0x13   :  { %33 = dma.hbm_to_vmem [thread:$0]  %s512_s1, 128, %s31_s19, [#allocation7]  }
  0x14   :  { %s279_s9 = scalar_lea.hbm %s514_s3, 128 }
  0x15   :  { %p280_p8 = scmp.ne.s32.totalorder %s514_s3, %s279_s9  ;;  %p283_p9 = scmp.lt.u32.totalorder %s279_s9, %s514_s3 }
  0x17   :  { %p285_p10 = pnand %p283_p9, %p280_p8 }
  0x19   :  { %288 = shalt.err (!%p285_p10)
}
  0x1a   :  { %s289_s14 = scalar_lea.vmem %s51_s21, 128  ;;  %p294_p12 = scmp.lt.s32.totalorder %s51_s21, %s51_s21 }
  0x1b   :  { %p290_p11 = scmp.ne.s32.totalorder %s51_s21, %s289_s14  ;;  %p295_p13 = scmp.lt.s32.totalorder %s289_s14, %s289_s14 }
  0x1d   :  { %p296_p0 = por %p295_p13, %p294_p12 }
  0x1f   :  { %p297_p1 = pnand %p296_p0, %p290_p11 }
  0x21   :  { %300 = shalt.err (!%p297_p1)
}
  0x22   :  { %53 = dma.hbm_to_vmem [thread:$0]  %s514_s3, 128, %s51_s21, [#allocation10]  }
  0x23   :  { %s399_s16 = smov [#allocation3]   ;;  %s400_s18 = smov [#allocation8]  }
  0x24   :  { %s20_s17 = sshll.u32 %s399_s16, 4  ;;  %s40_s19 = sshll.u32 %s400_s18, 4  ;;  %s21_s17 = int_to_ptr.vmem [resolvable:$true] %s20_s17  ;;  %s41_s19 = int_to_ptr.vmem [resolvable:$true] %s40_s19 }
  0x25   :  { %s301_s23 = scalar_lea.hbm %s511_s0, 128 }
  0x26   :  { %p302_p2 = scmp.ne.s32.totalorder %s511_s0, %s301_s23  ;;  %p305_p3 = scmp.lt.u32.totalorder %s301_s23, %s511_s0 }
  0x28   :  { %p307_p4 = pnand %p305_p3, %p302_p2 }
  0x2a   :  { %310 = shalt.err (!%p307_p4)
}
  0x2b   :  { %s311_s3 = scalar_lea.vmem %s21_s17, 128  ;;  %p316_p6 = scmp.lt.s32.totalorder %s21_s17, %s21_s17 }
  0x2c   :  { %p312_p5 = scmp.ne.s32.totalorder %s21_s17, %s311_s3  ;;  %p317_p7 = scmp.lt.s32.totalorder %s311_s3, %s311_s3 }
  0x2e   :  { %p318_p8 = por %p317_p7, %p316_p6 }
  0x30   :  { %p319_p9 = pnand %p318_p8, %p312_p5 }
  0x32   :  { %322 = shalt.err (!%p319_p9)
}
  0x33   :  { %23 = dma.hbm_to_vmem [thread:$0]  %s511_s0, 128, %s21_s17, [#allocation4]  }
  0x34   :  { %s323_s6 = scalar_lea.hbm %s513_s2, 16 }
  0x35   :  { %p324_p10 = scmp.ne.s32.totalorder %s513_s2, %s323_s6  ;;  %p327_p11 = scmp.lt.u32.totalorder %s323_s6, %s513_s2 }
  0x37   :  { %p329_p12 = pnand %p327_p11, %p324_p10 }
  0x39   :  { %332 = shalt.err (!%p329_p12)
}
  0x3a   :  { %s333_s11 = scalar_lea.vmem %s41_s19, 16  ;;  %s337_s12 = scalar_lea.vmem %s41_s19, 32 }
  0x3b   :  { %p334_p13 = scmp.ne.s32.totalorder %s41_s19, %s333_s11  ;;  %p338_p0 = scmp.lt.s32.totalorder %s41_s19, %s41_s19 }
  0x3c   :  { %p339_p1 = scmp.lt.s32.totalorder %s337_s12, %s333_s11 }
  0x3e   :  { %p340_p2 = por %p339_p1, %p338_p0 }
  0x40   :  { %p341_p3 = pnand %p340_p2, %p334_p13 }
  0x42   :  { %344 = shalt.err (!%p341_p3)
}
  0x43   :  { %43 = dma.hbm_to_vmem [thread:$0]  %s513_s2, 16, %s41_s19, [#allocation7]  }
  0x44   :  { %s401_s14 = smov [#allocation11]   ;;  %s345_s17 = scalar_lea.hbm %s515_s4, 128 }
  0x45   :  { %s60_s1 = sshll.u32 %s401_s14, 4  ;;  %p346_p4 = scmp.ne.s32.totalorder %s515_s4, %s345_s17  ;;  %s61_s1 = int_to_ptr.vmem [resolvable:$true] %s60_s1 }
  0x46   :  { %p349_p5 = scmp.lt.u32.totalorder %s345_s17, %s515_s4 }
  0x48   :  { %p351_p6 = pnand %p349_p5, %p346_p4 }
  0x4a   :  { %354 = shalt.err (!%p351_p6)
}
  0x4b   :  { %s355_s24 = scalar_lea.vmem %s61_s1, 128  ;;  %p360_p8 = scmp.lt.s32.totalorder %s61_s1, %s61_s1 }
  0x4c   :  { %p356_p7 = scmp.ne.s32.totalorder %s61_s1, %s355_s24  ;;  %p361_p9 = scmp.lt.s32.totalorder %s355_s24, %s355_s24 }
  0x4e   :  { %p362_p10 = por %p361_p9, %p360_p8 }
  0x50   :  { %p363_p11 = pnand %p362_p10, %p356_p7 }
  0x52   :  { %366 = shalt.err (!%p363_p11)
}
  0x53   :  { %63 = dma.hbm_to_vmem [thread:$0]  %s515_s4, 128, %s61_s1, [#allocation10]  }
  0x54   :  { %389 = dma.done.wait [#allocation4], 128  }
  0x55   :  { %390 = vsyncadd [#allocation4], 4294967168 }
  0x56   :  { %391 = dma.done.wait [#allocation7], 144  }
  0x57   :  { %392 = vsyncadd [#allocation7], 4294967152 }
  0x58   :  { %393 = dma.done.wait [#allocation10], 256  }
  0x59   :  { %394 = vsyncadd [#allocation10], 4294967040  ;;  %vm83_vm0 = vcmask 0   ;;  %v402_v0 = vmov 0.0   ;;  %vm403_vm1 = vmmov 0   ;;  %v404_v1 = vmov 0  }
  0x5a   :  { %84 = vst.msk [vmem:[#allocation2] sm:$0x1] %vm83_vm0, %v402_v0  ;;  %238 = vmatprep.subr.mxu0 %v402_v0  ;;  %240 = vmatprep.mubr.msk.f32.mxu0 %vm403_vm1, %v402_v0  ;;  %vm92_vm2 = vcmask 261120   ;;  %v96_v2 = vld [vmem:[#allocation6] sm:$0xff]  ;;  %v175_v3 = vld [vmem:[#allocation9] sm:$0xff]  ;;  %v85_v4 = vld [vmem:[#allocation3] sm:$0xff]  ;;  %v173_v9 = vlaneseq }
  0x5b   :  { %252 = vset.pattern.permute.xlu0 %v404_v1  ;;  %239 = vmatpush3.xpose.msk.msra.mxu0 %vm92_vm2, %v96_v2  ;;  %v89_v5 = vmul.f32 2.0, %v85_v4  ;;  %vm181_vm4 = vcmask 64512   ;;  %v185_v16 = vld [vmem:[#allocation11] sm:$0xff]  ;;  %vm200_vm5 = vcmask 7168   ;;  %s405_s4 = smov [#allocation12]  }
  0x5c   :  { %177 = vperm.xlu0 %252, %v175_v3   ;;  %v174_v10 = vand.u32 127, %v173_v9  ;;  %s223_s25 = sshll.u32 %s405_s4, 4  ;;  %s224_s25 = int_to_ptr.vmem [resolvable:$true] %s223_s25 }
  0x5d   :  { %v90_v6 = vsub.f32 %v96_v2, %v89_v5  ;;  %s367_s26 = scalar_lea.vmem %s224_s25, 16  ;;  %s371_s27 = scalar_lea.vmem %s224_s25, 32 }
  0x5e   :  { %241 = vmatmul.mubr.msk.f32.vlgmr.msra.gmra.mrb[0].mxu0 %vm92_vm2, %v85_v4  ;;  %p368_p12 = scmp.ne.s32.totalorder %s224_s25, %s367_s26  ;;  %p372_p13 = scmp.lt.s32.totalorder %s224_s25, %s224_s25 }
  0x5f   :  { %v91_v7 = vmul.f32 %v96_v2, %v90_v6  ;;  %p373_p0 = scmp.lt.s32.totalorder %s371_s27, %s367_s26 }
  0x61   :  { %v93_v8 = vsel %vm92_vm2, %v91_v7, 0.0  ;;  %v199_v38 = vld [vmem:[#allocation2] sm:$0x1]  ;;  %p374_p1 = por %p373_p0, %p372_p13 }
  0x62   :  { %94 = vadd.xlane.f32.xlu1 %v93_v8 }
  0x63   :  { %p375_p2 = pnand %p374_p1, %p368_p12 }
  0xdb   :  { %v178_v11 = vpop.permute.xlu0 %177 }
  0xdc   :  { %vm179_vm3 = vcmp.eq.s32.totalorder %v174_v10, %v178_v11 }
  0xef   :  { %v95_v19 = vpop.xlane.xlu1 %94 }
 0x131   :  { %v169_v12 = vpop.f32.mrb[0].mxu0 }
 0x132   :  { %v180_v13 = vsel %vm179_vm3, %v169_v12, 0.0  ;;  %v242_v14 = vpop.f32.mrb[1].mxu0 }
 0x133   :  { %v182_v15 = vsel %vm181_vm4, %v180_v13, 0.0 }
 0x134   :  { %183 = vadd.xlane.f32.xlu0 %v182_v15 }
 0x1c1   :  { %v184_v17 = vpop.xlane.xlu0 %183 }
 0x1c2   :  { %v186_v18 = vmul.f32 2.0, %v184_v17 }
 0x1c4   :  { %v187_v20 = vsub.f32 %v185_v16, %v186_v18 }
 0x1c6   :  { %v188_v21 = vsub.f32 %v95_v19, %v187_v20 }
 0x1c8   :  { %v189_v22 = vmul.f32 5.0, %v188_v21 }
 0x1ca   :  { %v191_v23 = vand.u32 2147483647, %v189_v22  ;;  %v190_v29 = vmax.f32 %v189_v22, 0.0 }
 0x1cc   :  { %v192_v24 = vsub.f32 0.0, %v191_v23 }
 0x1ce   :  { %v193_v25 = vmul.f32 1.442695, %v192_v24 }
 0x1d0   :  { %253 = vpow2.f32 %v193_v25 }
 0x1da   :  { %v254_v26 = vpop.eup %253 }
 0x1db   :  { %v195_v27 = vadd.f32 1.0, %v254_v26 }
 0x1dd   :  { %255 = vlog2.f32 %v195_v27 }
 0x1e7   :  { %v256_v28 = vpop.eup %255 }
 0x1e8   :  { %v197_v30 = vmul.f32 0.6931472, %v256_v28 }
 0x1ea   :  { %v198_v31 = vadd.f32 %v197_v30, %v190_v29 }
 0x1ec   :  { %v201_v32 = vsel %vm200_vm5, %v198_v31, 0.0 }
 0x1ed   :  { %v202_v33 = vrot.slane %v201_v32, 4 }
 0x1ef   :  { %v203_v34 = vadd.f32 %v202_v33, %v201_v32 }
 0x1f1   :  { %v204_v35 = vrot.slane %v203_v34, 2 }
 0x1f3   :  { %v205_v36 = vadd.f32 %v204_v35, %v203_v34 }
 0x1f5   :  { %v206_v37 = vrot.slane %v205_v36, 1 }
 0x1f7   :  { %v207_v39 = vadd.f32 %v206_v37, %v205_v36 }
 0x1f9   :  { %v208_v40 = vadd.f32 %v207_v39, %v199_v38 }
 0x1fb   :  { %210 = vst.msk [vmem:[#allocation2] sm:$0x1] %vm83_vm0, %v208_v40 }
 0x202   :  { %v214_v41 = vld [vmem:[#allocation2] sm:$0x1] }
 0x203   :  { %v215_v42 = vmul.f32 0.125, %v214_v41 }
 0x205   :  { %216 = vst.msk [vmem:[#allocation12] sm:$0x1] %vm83_vm0, %v215_v42 }
 0x206   :  { %378 = shalt.err (!%p375_p2)
}
 0x207   :  { %s379_s28 = scalar_lea.hbm %s516_s5, 16 }
 0x208   :  { %p380_p3 = scmp.ne.s32.totalorder %s516_s5, %s379_s28  ;;  %p383_p4 = scmp.lt.u32.totalorder %s379_s28, %s516_s5 }
 0x20a   :  { %p385_p5 = pnand %p383_p4, %p380_p3 }
 0x20c   :  { %388 = shalt.err (!%p385_p5)
}
 0x20d   :  { %226 = dma.vmem_to_hbm [thread:$0]  %s224_s25, 16, %s516_s5, [#allocation5]  }
 0x20e   :  { %395 = dma.done.wait [#allocation5], 16  }
 0x20f   :  { %396 = vsyncadd [#allocation5], 4294967280 }
 0x210   :  { %230 = vsyncpa [#allocation4], 1 }
 0x211   :  { %231 = vsyncpa [#allocation7], 1 }
 0x212   :  { %232 = vsyncpa [#allocation10], 1 }
 0x213   :  { %233 = vsyncpa [#allocation5], 1 }

</bundles_post_ra>
